<compile_context>
chip_gen: v5e
topology: v5e:2x2
jax: 0.10.0
libtpu: 0.0.40
codegen_flags: <defaults>
</compile_context>

<pallas_src>
import functools

import jax
import jax.numpy as jnp
from jax.experimental import pallas as pl
from jax.experimental.pallas import tpu as pltpu


def _round_up(x, m):
    return ((x + m - 1) // m) * m


def qnetwork_kernel(x_ref, w1_ref, w2_ref, w3_ref, b_ref, o_ref):
    """One batch tile. Layout: activations are [feature, TB] (batch on lanes)."""
    h1_dim = w1_ref.shape[0]
    h2_dim = w2_ref.shape[0]
    out_dim = o_ref.shape[0]
    # Biases are packed into a single f32 column at 8-aligned row offsets.
    off2 = _round_up(h1_dim, 8)
    off3 = off2 + _round_up(h2_dim, 8)
    b1 = b_ref[0:h1_dim, :]                 # [H1, 1] -> broadcasts over lanes
    b2 = b_ref[off2:off2 + h2_dim, :]       # [H2, 1]
    b3 = b_ref[off3:off3 + out_dim, :]      # [O, 1]

    # Hidden layer 1: single fused K=8 bf16 dot on the MXU, f32 accumulate.
    h = jnp.dot(w1_ref[...], x_ref[...], preferred_element_type=jnp.float32) + b1
    h = jnp.maximum(h, 0.0)
    # Hidden layer 2: bf16 dot, f32 accumulate, bias + ReLU.
    h = jnp.dot(w2_ref[...], h.astype(w2_ref.dtype),
                preferred_element_type=jnp.float32) + b2
    h = jnp.maximum(h, 0.0)
    # Output layer.
    if out_dim == 1:
        # VPU multiply + XLU sublane-reduce: keeps the 1-row layer off the MXU.
        # w3_ref is the weight row stored as an f32 column [H2, 1].
        o = jnp.sum(h * w3_ref[...], axis=0, keepdims=True) + b3
    else:
        o = jnp.dot(w3_ref[...], h.astype(w3_ref.dtype),
                    preferred_element_type=jnp.float32) + b3
    o_ref[...] = o.astype(o_ref.dtype)      # [O, TB] lane-dense store


def prepare_params(params):
    """Torch-layout params (W [out,in], b [out]) -> kernel layout:
    bf16 hidden weights, w3 as an f32 column (when out_dim == 1),
    all biases packed into one f32 column at 8-aligned offsets."""
    w1, b1, w2, b2, w3, b3 = params
    h1_dim, h2_dim, out_dim = w1.shape[0], w2.shape[0], w3.shape[0]
    w1_k = w1.astype(jnp.bfloat16)
    w2_k = w2.astype(jnp.bfloat16)
    if out_dim == 1:
        w3_k = w3.reshape(h2_dim, 1).astype(jnp.float32)   # column for VPU path
    else:
        w3_k = w3.astype(jnp.bfloat16)
    off2 = _round_up(h1_dim, 8)
    off3 = off2 + _round_up(h2_dim, 8)
    total = off3 + out_dim
    bias = jnp.zeros((total, 1), jnp.float32)
    bias = bias.at[0:h1_dim, 0].set(b1)
    bias = bias.at[off2:off2 + h2_dim, 0].set(b2)
    bias = bias.at[off3:off3 + out_dim, 0].set(b3)
    return w1_k, w2_k, w3_k, bias


@functools.partial(jax.jit, static_argnames=("batch_tile",))
def qnetwork_forward(state, action, kernel_params, *, batch_tile=16384):
    """Pallas-backed QNetwork forward. state: [B, Ds], action: [B, Da] -> [B, O]."""
    w1, w2, w3, bias = kernel_params
    B, ds = state.shape
    da = action.shape[1]
    in_dim = ds + da
    h1_dim = w1.shape[0]
    h2_dim = w2.shape[0]
    out_dim = bias.shape[0] - (_round_up(h1_dim, 8) + _round_up(h2_dim, 8))

    # Tile sizing: multiple of 128 lanes, pad batch only to 128, ragged last
    # block handled by Pallas. Ensure >=2 grid steps when possible so both
    # TensorCores get work on v7x.
    pb = _round_up(B, 128)
    tb = max(128, (min(batch_tile, pb) // 128) * 128)
    if tb >= pb and pb >= 256:
        tb = _round_up(pb // 2, 128)
    grid = pl.cdiv(pb, tb)

    # Fused concat + transpose + bf16 cast + pad (single host-side fusion):
    # feature-major [in_dim, pb] with batch on the 128-lane axis.
    x_t = jnp.concatenate([state.T, action.T], axis=0).astype(jnp.bfloat16)
    x_t = jnp.pad(x_t, ((0, 0), (0, pb - B)))

    out_t = pl.pallas_call(
        qnetwork_kernel,
        out_shape=jax.ShapeDtypeStruct((out_dim, pb), jnp.float32),
        grid_spec=pltpu.PrefetchScalarGridSpec(
            num_scalar_prefetch=0,
            grid=(grid,),
            in_specs=[
                pl.BlockSpec((in_dim, tb), lambda i: (0, i)),   # fused input tile
                pl.BlockSpec(w1.shape, lambda i: (0, 0)),       # weights stay resident
                pl.BlockSpec(w2.shape, lambda i: (0, 0)),
                pl.BlockSpec(w3.shape, lambda i: (0, 0)),
                pl.BlockSpec(bias.shape, lambda i: (0, 0)),     # packed biases
            ],
            out_specs=pl.BlockSpec((out_dim, tb), lambda i: (0, i)),
        ),
        compiler_params=pltpu.CompilerParams(
            dimension_semantics=("parallel",),   # shard batch tiles across TCs
            vmem_limit_bytes=64 * 1024 * 1024,
        ),
    )(x_t, w1, w2, w3, bias)

    return out_t[:, :B].T                                   # back to [B, O]


def init_params(key, input_dim, hidden_dims, out_dim):
    """Deterministic Linear params, torch layout: W [out, in], b [out]."""
    dims = [input_dim] + list(hidden_dims) + [out_dim]
    params = []
    for i in range(len(dims) - 1):
        fan_in, fan_out = dims[i], dims[i + 1]
        key, kw, kb = jax.random.split(key, 3)
        bound = 1.0 / jnp.sqrt(fan_in)  # matches torch.nn.Linear default init range
        w = jax.random.uniform(kw, (fan_out, fan_in), jnp.float32, -bound, bound)
        b = jax.random.uniform(kb, (fan_out,), jnp.float32, -bound, bound)
        params.extend([w, b])
    return tuple(params)


def qnetwork_ref(state, action, params):
    """Pure-JAX f32 reference (mirrors the PyTorch forward)."""
    w1, b1, w2, b2, w3, b3 = params
    x = jnp.concatenate([state, action], axis=1)
    h = jnp.maximum(x @ w1.T + b1, 0.0)
    h = jnp.maximum(h @ w2.T + b2, 0.0)
    return h @ w3.T + b3


if __name__ == "__main__":
    # Small shapes: state_dim=6, action_dim=2 -> input_dim=8, hidden=[32,32], out=1
    B, state_dim, action_dim = 2, 6, 2
    hidden_dims = [32, 32]
    out_dim = 1

    key = jax.random.PRNGKey(0)
    k_state, k_action, k_params = jax.random.split(key, 3)
    state = jax.random.normal(k_state, (B, state_dim), jnp.float32)
    action = jax.random.normal(k_action, (B, action_dim), jnp.float32)
    params = init_params(k_params, state_dim + action_dim, hidden_dims, out_dim)
    kernel_params = prepare_params(params)

    out = qnetwork_forward(state, action, kernel_params)
    jax.block_until_ready(out)

    ref = qnetwork_ref(state, action, params)
    assert out.shape == (B, out_dim), out.shape
    # bf16 MXU operands (per perf review) -> tolerances widened vs. f32 reference.
    assert jnp.allclose(out, ref, atol=5e-2, rtol=5e-2), (out, ref)

    print("KERNEL_OK")
</pallas_src>

<mosaic_0001>
module attributes {stable_mosaic.version = 11 : i64} {
  func.func @qnetwork_kernel(%arg0: i32, %arg1: memref<8x128xbf16, #tpu.memory_space<vmem>>, %arg2: memref<32x8xbf16, #tpu.memory_space<vmem>>, %arg3: memref<32x32xbf16, #tpu.memory_space<vmem>>, %arg4: memref<32x1xf32, #tpu.memory_space<vmem>>, %arg5: memref<65x1xf32, #tpu.memory_space<vmem>>, %arg6: memref<1x128xf32, #tpu.memory_space<vmem>>) attributes {dimension_semantics = [#tpu.dimension_semantics<parallel>], iteration_bounds = array<i64: 1>, scalar_prefetch = 0 : i64, scratch_operands = 0 : i64, tpu.core_type = #tpu.core_type<tc>, window_params = [{transform_indices = @transform_0, window_bounds = array<i64: 8, 128>}, {pipeline_mode = #tpu.pipeline_mode<synchronous>, transform_indices = @transform_1, window_bounds = array<i64: 32, 8>}, {pipeline_mode = #tpu.pipeline_mode<synchronous>, transform_indices = @transform_2, window_bounds = array<i64: 32, 32>}, {pipeline_mode = #tpu.pipeline_mode<synchronous>, transform_indices = @transform_3, window_bounds = array<i64: 32, 1>}, {pipeline_mode = #tpu.pipeline_mode<synchronous>, transform_indices = @transform_4, window_bounds = array<i64: 65, 1>}, {transform_indices = @transform_5, window_bounds = array<i64: 1, 128>}]} {
    %c0 = arith.constant 0 : index
    %c0_0 = arith.constant 0 : index
    %0 = vector.load %arg5[%c0, %c0_0] : memref<65x1xf32, #tpu.memory_space<vmem>>, vector<32x1xf32>
    %c32 = arith.constant 32 : index
    %c0_1 = arith.constant 0 : index
    %1 = vector.load %arg5[%c32, %c0_1] : memref<65x1xf32, #tpu.memory_space<vmem>>, vector<32x1xf32>
    %c64 = arith.constant 64 : index
    %c0_2 = arith.constant 0 : index
    %2 = vector.load %arg5[%c64, %c0_2] : memref<65x1xf32, #tpu.memory_space<vmem>>, vector<1x1xf32>
    %c0_3 = arith.constant 0 : index
    %c0_4 = arith.constant 0 : index
    %3 = vector.load %arg2[%c0_3, %c0_4] : memref<32x8xbf16, #tpu.memory_space<vmem>>, vector<32x8xbf16>
    %c0_5 = arith.constant 0 : index
    %c0_6 = arith.constant 0 : index
    %4 = vector.load %arg1[%c0_5, %c0_6] : memref<8x128xbf16, #tpu.memory_space<vmem>>, vector<8x128xbf16>
    %cst = arith.constant dense<0.000000e+00> : vector<32x128xf32>
    %5 = tpu.matmul %3, %4, %cst {dimension_numbers = #tpu.dot_dimension_numbers<[1], [0], [0], [1], [0, 0, 1, 1], [], []>} : vector<32x8xbf16>, vector<8x128xbf16>, vector<32x128xf32> -> vector<32x128xf32>
    %6 = vector.broadcast %0 : vector<32x1xf32> to vector<32x128xf32>
    %7 = arith.addf %5, %6 : vector<32x128xf32>
    %cst_7 = arith.constant 0.000000e+00 : f32
    %8 = vector.broadcast %cst_7 : f32 to vector<32x128xf32>
    %9 = arith.maximumf %7, %8 : vector<32x128xf32>
    %c0_8 = arith.constant 0 : index
    %c0_9 = arith.constant 0 : index
    %10 = vector.load %arg3[%c0_8, %c0_9] : memref<32x32xbf16, #tpu.memory_space<vmem>>, vector<32x32xbf16>
    %11 = arith.truncf %9 : vector<32x128xf32> to vector<32x128xbf16>
    %cst_10 = arith.constant dense<0.000000e+00> : vector<32x128xf32>
    %12 = tpu.matmul %10, %11, %cst_10 {dimension_numbers = #tpu.dot_dimension_numbers<[1], [0], [0], [1], [0, 0, 1, 1], [], []>} : vector<32x32xbf16>, vector<32x128xbf16>, vector<32x128xf32> -> vector<32x128xf32>
    %13 = vector.broadcast %1 : vector<32x1xf32> to vector<32x128xf32>
    %14 = arith.addf %12, %13 : vector<32x128xf32>
    %cst_11 = arith.constant 0.000000e+00 : f32
    %15 = vector.broadcast %cst_11 : f32 to vector<32x128xf32>
    %16 = arith.maximumf %14, %15 : vector<32x128xf32>
    %c0_12 = arith.constant 0 : index
    %c0_13 = arith.constant 0 : index
    %17 = vector.load %arg4[%c0_12, %c0_13] : memref<32x1xf32, #tpu.memory_space<vmem>>, vector<32x1xf32>
    %18 = vector.broadcast %17 : vector<32x1xf32> to vector<32x128xf32>
    %19 = arith.mulf %16, %18 : vector<32x128xf32>
    %cst_14 = arith.constant dense<0.000000e+00> : vector<128xf32>
    %20 = vector.multi_reduction <add>, %19, %cst_14 [0] : vector<32x128xf32> to vector<128xf32>
    %21 = vector.shape_cast %20 : vector<128xf32> to vector<1x128xf32>
    %22 = vector.broadcast %2 : vector<1x1xf32> to vector<1x128xf32>
    %23 = arith.addf %21, %22 : vector<1x128xf32>
    %c0_15 = arith.constant 0 : index
    %c0_16 = arith.constant 0 : index
    %24 = vector.load %arg6[%c0_15, %c0_16] : memref<1x128xf32, #tpu.memory_space<vmem>>, vector<1x128xf32>
    tpu.vector_store %arg6[%c0_15, %c0_16], %23 {strides = array<i32>} : memref<1x128xf32, #tpu.memory_space<vmem>>, vector<1x128xf32>,
    return
  }
  func.func @transform_0(%arg0: i32) -> (i32, i32) {
    %c0_i32 = arith.constant 0 : i32
    %c0_i32_0 = arith.constant 0 : i32
    return %c0_i32, %arg0 : i32, i32
  }
  func.func @transform_1(%arg0: i32) -> (i32, i32) {
    %c0_i32 = arith.constant 0 : i32
    %c0_i32_0 = arith.constant 0 : i32
    %c0_i32_1 = arith.constant 0 : i32
    return %c0_i32, %c0_i32_0 : i32, i32
  }
  func.func @transform_2(%arg0: i32) -> (i32, i32) {
    %c0_i32 = arith.constant 0 : i32
    %c0_i32_0 = arith.constant 0 : i32
    %c0_i32_1 = arith.constant 0 : i32
    return %c0_i32, %c0_i32_0 : i32, i32
  }
  func.func @transform_3(%arg0: i32) -> (i32, i32) {
    %c0_i32 = arith.constant 0 : i32
    %c0_i32_0 = arith.constant 0 : i32
    %c0_i32_1 = arith.constant 0 : i32
    return %c0_i32, %c0_i32_0 : i32, i32
  }
  func.func @transform_4(%arg0: i32) -> (i32, i32) {
    %c0_i32 = arith.constant 0 : i32
    %c0_i32_0 = arith.constant 0 : i32
    %c0_i32_1 = arith.constant 0 : i32
    return %c0_i32, %c0_i32_0 : i32, i32
  }
  func.func @transform_5(%arg0: i32) -> (i32, i32) {
    %c0_i32 = arith.constant 0 : i32
    %c0_i32_0 = arith.constant 0 : i32
    return %c0_i32, %arg0 : i32, i32
  }
}

</mosaic_0001>

<bundles_post_ra>
// kernel: qnetwork_forward.1
= control target key start
LH: loop header
LB: loop body
LE: loop exit
PB: predicated region body
PF: predicated region fallthrough
CT: control target
= control target key end

     0   :  { %vm72_vm0 = vcmask 1043456   ;;  %v244_v0 = vmov 0   ;;  %vm65_vm1 = vcmask 64512   ;;  %vm135_vm2 = vcmask 261120   ;;  %s332_s4 = inlined_call_operand.vmem [shape: f32[65,1], index: 4, kind: input, shape index: {}]   ;;  %s333_s0 = inlined_call_operand.vmem [shape: bf16[8,128], index: 0, kind: input, shape index: {}]   ;;  %s334_s1 = inlined_call_operand.vmem [shape: bf16[32,8], index: 1, kind: input, shape index: {}]   ;;  %s335_s3 = inlined_call_operand.vmem [shape: f32[32,1], index: 3, kind: input, shape index: {}]   ;;  %s336_s2 = inlined_call_operand.vmem [shape: bf16[32,32], index: 2, kind: input, shape index: {}]   ;;  %s337_s5 = inlined_call_operand.vmem [shape: f32[1,128], index: 5, kind: output, shape index: {}]  }
   0x1   :  { %241 = vset.pattern.permute.xlu0 %v244_v0  ;;  %242 = vset.pattern.permute.xlu1 %v244_v0  ;;  %v23_v1 = vld [vmem:[%s332_s4 + $0x10] sm:$0xff]  ;;  %v21_v2 = vld [vmem:[%s332_s4] sm:$0xff]  ;;  %v234_v5 = vld [vmem:[%s334_s1 + $0x8] sm:$0xff] }
   0x2   :  { %v34_v3 = vld [vmem:[%s333_s0] sm:$0xf]  ;;  %47 = vperm.xlu0 %241, %v23_v1   ;;  %37 = vperm.xlu1 %242, %v21_v2   ;;  %v24_v7 = vld [vmem:[%s332_s4 + $0x18] sm:$0xff]  ;;  %v22_v8 = vld [vmem:[%s332_s4 + $0x8] sm:$0xff] }
   0x3   :  { %v74_v4 = vsel %vm72_vm0, %v34_v3, 0  ;;  %v233_v6 = vld [vmem:[%s334_s1] sm:$0xff]  ;;  %243 = vset.pattern.permute.xlu2 %v244_v0  ;;  %v27_v9 = vld [vmem:[%s332_s4 + $0x30] sm:$0xff]  ;;  %v28_v10 = vld [vmem:[%s332_s4 + $0x38] sm:$0xff] }
   0x4   :  { %237 = vmatpush.bf16.msra.mxu3 %v74_v4  ;;  %83 = vmatpush.bf16.msra.mxu0 %v74_v4  ;;  %v166_v11 = vld [vmem:[%s335_s3 + $0x8] sm:$0xff]  ;;  %v167_v12 = vld [vmem:[%s335_s3 + $0x10] sm:$0xff]  ;;  %v29_v13 = vld [vmem:[%s332_s4 + $0x40] sm:$0x1] }
   0x5   :  { %v25_v14 = vld [vmem:[%s332_s4 + $0x20] sm:$0xff]  ;;  %v26_v16 = vld [vmem:[%s332_s4 + $0x28] sm:$0xff]  ;;  %v168_v34 = vld [vmem:[%s335_s3 + $0x18] sm:$0xff] }
   0x6   :  { %107 = vperm.xlu2 %243, %v25_v14   ;;  %v165_v20 = vld [vmem:[%s335_s3] sm:$0xff]  ;;  %v236_v37 = vld [vmem:[%s336_s2 + $0x8] sm:$0xff] }
   0x7   :  { %222 = vmatmul.msk.bf16.vlgmr.msra.gmra.mxu3 %vm65_vm1, %v234_v5  ;;  %221 = vmatmul.msk.bf16.vlgmr.msra.gmra.mxu0 %vm65_vm1, %v233_v6  ;;  %v235_v36 = vld [vmem:[%s336_s2] sm:$0xff] }
   0xa   :  { %52 = vperm.xlu0 %241, %v24_v7   ;;  %42 = vperm.xlu1 %242, %v22_v8  }
   0xe   :  { %112 = vperm.xlu2 %243, %v26_v16  }
  0x12   :  { %117 = vperm.xlu0 %241, %v27_v9   ;;  %122 = vperm.xlu1 %242, %v28_v10  }
  0x16   :  { %171 = vperm.xlu2 %243, %v165_v20  }
  0x1a   :  { %176 = vperm.xlu0 %241, %v166_v11   ;;  %181 = vperm.xlu1 %242, %v167_v12  }
  0x1e   :  { %186 = vperm.xlu2 %243, %v168_v34  }
  0x22   :  { %204 = vperm.xlu0 %241, %v29_v13  }
  0x60   :  { %v108_v38 = vpop.permute.xlu2 %107 }
  0x68   :  { %v113_v39 = vpop.permute.xlu2 %112 }
  0x70   :  { %v172_v45 = vpop.permute.xlu2 %171 }
  0x74   :  { %v48_v17 = vpop.permute.xlu0 %47  ;;  %v38_v18 = vpop.permute.xlu1 %37 }
  0x78   :  { %v187_v61 = vpop.permute.xlu2 %186 }
  0x7c   :  { %v53_v22 = vpop.permute.xlu0 %52  ;;  %v43_v24 = vpop.permute.xlu1 %42 }
  0x84   :  { %v85_v15 = vpop.f32.mrf.mxu0  ;;  %v118_v41 = vpop.permute.xlu0 %117 }
  0x85   :  { %v86_v26 = vadd.f32 %v85_v15, %v38_v18  ;;  %v123_v43 = vpop.permute.xlu1 %122 }
  0x87   :  { %v95_v31 = vmax.f32 %v86_v26, 0.0 }
  0x8a   :  { %v90_v19 = vpop.f32.mrf.mxu3 }
  0x8b   :  { %v91_v23 = vadd.f32 %v90_v19, %v48_v17 }
  0x8c   :  { %v87_v21 = vpop.f32.mrf.mxu0  ;;  %v177_v51 = vpop.permute.xlu0 %176 }
  0x8d   :  { %v88_v27 = vadd.f32 %v87_v21, %v43_v24  ;;  %v97_v29 = vmax.f32 %v91_v23, 0.0  ;;  %v182_v58 = vpop.permute.xlu1 %181 }
  0x8f   :  { %v96_v32 = vmax.f32 %v88_v27, 0.0 }
  0x91   :  { %v103_v35 = vpack.c.bf16 %v96_v32, %v95_v31 }
  0x92   :  { %v92_v25 = vpop.f32.mrf.mxu3 }
  0x93   :  { %v93_v28 = vadd.f32 %v92_v25, %v53_v22 }
  0x94   :  { %v205_v7 = vpop.permute.xlu0 %204 }
  0x95   :  { %v98_v30 = vmax.f32 %v93_v28, 0.0 }
  0x97   :  { %v104_v33 = vpack.c.bf16 %v98_v30, %v97_v29 }
  0x99   :  { %148 = vmatpush.bf16.msra.mxu1 %v104_v33  ;;  %238 = vmatpush.bf16.msra.mxu2 %v104_v33 }
  0x9d   :  { %149 = vmatpush.bf16.msra.mxu1 %v103_v35  ;;  %239 = vmatpush.bf16.msra.mxu2 %v103_v35 }
  0xa0   :  { %231 = vmatmul.msk.bf16.vlgmr.msra.gmra.mxu1 %vm135_vm2, %v235_v36  ;;  %232 = vmatmul.msk.bf16.vlgmr.msra.gmra.mxu2 %vm135_vm2, %v236_v37 }
 0x11d   :  { %v151_v40 = vpop.f32.mrf.mxu1 }
 0x11e   :  { %v152_v42 = vadd.f32 %v151_v40, %v108_v38 }
 0x120   :  { %v161_v47 = vmax.f32 %v152_v42, 0.0 }
 0x122   :  { %v189_v52 = vmul.f32 %v172_v45, %v161_v47 }
 0x123   :  { %v156_v44 = vpop.f32.mrf.mxu2 }
 0x124   :  { %v157_v48 = vadd.f32 %v156_v44, %v118_v41 }
 0x125   :  { %v153_v46 = vpop.f32.mrf.mxu1 }
 0x126   :  { %v154_v49 = vadd.f32 %v153_v46, %v113_v39  ;;  %v163_v53 = vmax.f32 %v157_v48, 0.0 }
 0x128   :  { %v162_v50 = vmax.f32 %v154_v49, 0.0  ;;  %v191_v59 = vmul.f32 %v182_v58, %v163_v53 }
 0x12a   :  { %v190_v54 = vmul.f32 %v177_v51, %v162_v50 }
 0x12b   :  { %v158_v55 = vpop.f32.mrf.mxu2 }
 0x12c   :  { %v193_v56 = vadd.f32 %v190_v54, %v189_v52  ;;  %v159_v57 = vadd.f32 %v158_v55, %v123_v43 }
 0x12e   :  { %v164_v60 = vmax.f32 %v159_v57, 0.0  ;;  %v194_v63 = vadd.f32 %v193_v56, %v191_v59 }
 0x130   :  { %v192_v62 = vmul.f32 %v187_v61, %v164_v60 }
 0x132   :  { %v195_v0 = vadd.f32 %v194_v63, %v192_v62 }
 0x134   :  { %v196_v1 = vrot.slane %v195_v0, 4 }
 0x136   :  { %v197_v2 = vadd.f32 %v196_v1, %v195_v0 }
 0x138   :  { %v198_v3 = vrot.slane %v197_v2, 2 }
 0x13a   :  { %v199_v4 = vadd.f32 %v198_v3, %v197_v2 }
 0x13c   :  { %v200_v5 = vrot.slane %v199_v4, 1 }
 0x13e   :  { %v201_v6 = vadd.f32 %v200_v5, %v199_v4 }
 0x140   :  { %v207_v8 = vadd.f32 %v205_v7, %v201_v6 }
 0x142   :  { %208 = vst [vmem:[%s337_s5] sm:$0x1] %v207_v8 }

</bundles_post_ra>
